<compile_context>
chip_gen: v7x
topology: tpu7x:2x2x1
jax: 0.10.0
libtpu: 0.0.40
codegen_flags: <defaults>
</compile_context>

<pallas_src>
import functools

import jax
import jax.numpy as jnp
from jax.experimental import pallas as pl
from jax.experimental.pallas import tpu as pltpu


def _bisenet_band_kernel(xb_ref, w1_ref, bias_ref, w2_ref, o_ref, *, w_pad):
    """One (image, row-band) grid step.

    xb_ref : (Cin, (tH+2)*w_pad + 2) bf16  zero-padded band (1-row + 1-col halo)
    w1_ref : (9, Cmid, Cin)          bf16  3x3 taps with BN scale folded in
    bias_ref: (Cmid, 1)              f32   folded BN bias
    w2_ref : (Ncls, Cmid)            bf16  1x1 conv weights
    o_ref  : (Ncls, tH*w_pad)        f32   band output, lane stride = w_pad
    """
    lanes = o_ref.shape[-1]                       # tH * w_pad
    x_band = xb_ref[...]                          # single VMEM load of the band

    # In-kernel im2col: nine statically lane-shifted views of the padded band,
    # each feeding one accumulating bf16 matmul (MXU) with f32 accumulation.
    mid = None
    for kh in range(3):
        for kw in range(3):
            off = kh * w_pad + kw                 # static lane offset
            slab = x_band[:, off:off + lanes]     # (Cin, lanes) bf16
            p = jnp.dot(w1_ref[kh * 3 + kw], slab,
                        preferred_element_type=jnp.float32)
            mid = p if mid is None else mid + p

    # Folded BN bias + ReLU in f32 on full vregs (VPU).
    mid = jnp.maximum(mid + bias_ref[...], 0.0)

    # 1x1 conv: (Ncls, Cmid) x (Cmid, lanes) on the MXU, f32 accumulation.
    out = jnp.dot(w2_ref[...], mid.astype(w2_ref.dtype),
                  preferred_element_type=jnp.float32)
    o_ref[...] = out.astype(o_ref.dtype)


def bisenet_output(x_nchw, w1_oihw, bn_scale, bn_bias, w2_oihw, *,
                   band_rows=None):
    """x_nchw: [N, Cin, H, W] f32.  Returns [N, Ncls, H, W] f32 (NCHW)."""
    N, Cin, H, W = x_nchw.shape
    Cmid = w1_oihw.shape[0]
    Ncls = w2_oihw.shape[0]
    Wp = W + 2                                    # one zero column each side

    # ---- spatial tiling: rows per band (must divide H) ----
    if band_rows is None:
        band_rows = max(1, 4096 // Wp)            # target ~4k lanes per step
    band_rows = max(1, min(band_rows, H))
    while H % band_rows:
        band_rows -= 1
    tH = band_rows
    nbands = H // tH
    lanes = tH * Wp                               # output lanes per band
    band_lp = (tH + 2) * Wp + 2                   # +2: (kh=2,kw=2) view in-bounds

    # ---- weight prep (fold BN scale into the 3x3 taps) ----
    w1 = w1_oihw * bn_scale[:, None, None, None]                  # (Cmid,Cin,3,3)
    w1 = jnp.transpose(w1, (2, 3, 0, 1)).reshape(9, Cmid, Cin)
    w1 = w1.astype(jnp.bfloat16)
    bias_col = bn_bias.reshape(Cmid, 1).astype(jnp.float32)
    w2 = w2_oihw[:, :, 0, 0].astype(jnp.bfloat16)                 # (Ncls, Cmid)

    # ---- input prep: one zero-padded copy, overlapping row-bands, bf16 ----
    xp = jnp.pad(x_nchw, ((0, 0), (0, 0), (1, 1), (1, 1)))        # (N,Cin,H+2,Wp)
    bands = [xp[:, :, b * tH: b * tH + tH + 2, :] for b in range(nbands)]
    xb = jnp.stack(bands, axis=1).reshape(N, nbands, Cin, (tH + 2) * Wp)
    xb = jnp.pad(xb, ((0, 0), (0, 0), (0, 0), (0, 2))).astype(jnp.bfloat16)

    # ---- VMEM budget: 2x in block + 2x out block + weights + f32 mid scratch ----
    est = (2 * Cin * band_lp * 2                      # double-buffered input
           + 2 * Ncls * lanes * 4                     # double-buffered output
           + 2 * ((9 * Cmid * Cin + Ncls * Cmid) * 2 + Cmid * 4)   # weights/bias
           + (Cmid * 4 + Cin * 2) * lanes)            # f32 mid + one bf16 slab
    vmem_limit = int(min(48 * 2 ** 20, max(32 * 2 ** 20, 2 * est)))

    kernel = functools.partial(_bisenet_band_kernel, w_pad=Wp)
    grid_spec = pltpu.PrefetchScalarGridSpec(
        num_scalar_prefetch=0,
        grid=(N, nbands),
        in_specs=[
            pl.BlockSpec((None, None, Cin, band_lp), lambda n, b: (n, b, 0, 0)),
            pl.BlockSpec((9, Cmid, Cin), lambda n, b: (0, 0, 0)),
            pl.BlockSpec((Cmid, 1), lambda n, b: (0, 0)),
            pl.BlockSpec((Ncls, Cmid), lambda n, b: (0, 0)),
        ],
        out_specs=pl.BlockSpec((None, None, Ncls, lanes),
                               lambda n, b: (n, b, 0, 0)),
    )

    out = pl.pallas_call(
        kernel,
        out_shape=jax.ShapeDtypeStruct((N, nbands, Ncls, lanes), jnp.float32),
        grid_spec=grid_spec,
        compiler_params=pltpu.CompilerParams(
            dimension_semantics=("parallel", "parallel"),
            vmem_limit_bytes=vmem_limit),
    )(xb, w1, bias_col, w2)

    # (N, nbands, Ncls, tH, Wp) -> (N, Ncls, H, Wp) -> drop the Wp pad columns.
    out = out.reshape(N, nbands, Ncls, tH, Wp)
    out = jnp.transpose(out, (0, 2, 1, 3, 4)).reshape(N, Ncls, H, Wp)
    return out[:, :, :, :W]


def reference_forward_nchw(x_nchw, w1_oihw, bn_scale, bn_bias, w2_oihw):
    """Pure-JAX f32 reference mirroring the PyTorch forward (BN folded, eval)."""
    y = jax.lax.conv_general_dilated(
        x_nchw, w1_oihw, window_strides=(1, 1), padding=((1, 1), (1, 1)),
        dimension_numbers=("NCHW", "OIHW", "NCHW"))
    y = y * bn_scale[None, :, None, None] + bn_bias[None, :, None, None]
    y = jnp.maximum(y, 0.0)
    z = jax.lax.conv_general_dilated(
        y, w2_oihw, window_strides=(1, 1), padding="VALID",
        dimension_numbers=("NCHW", "OIHW", "NCHW"))
    return z


if __name__ == "__main__":
    # Module hyperparameters (small, consistent with BiSeNetOutput.__init__).
    N, in_chan, H, W = 2, 4, 16, 16
    mid_chan, n_classes = 8, 3

    key = jax.random.PRNGKey(0)
    k_x, k_w1, k_w2, k_g, k_b, k_m, k_v = jax.random.split(key, 7)

    x_nchw = jax.random.normal(k_x, (N, in_chan, H, W), dtype=jnp.float32)
    w1_oihw = jax.random.normal(k_w1, (mid_chan, in_chan, 3, 3),
                                dtype=jnp.float32) * 0.1
    w2_oihw = jax.random.normal(k_w2, (n_classes, mid_chan, 1, 1),
                                dtype=jnp.float32) * 0.1

    # BatchNorm2d params / running stats (inference-mode folding).
    gamma = 1.0 + 0.1 * jax.random.normal(k_g, (mid_chan,), dtype=jnp.float32)
    beta = 0.1 * jax.random.normal(k_b, (mid_chan,), dtype=jnp.float32)
    running_mean = 0.1 * jax.random.normal(k_m, (mid_chan,), dtype=jnp.float32)
    running_var = 1.0 + 0.1 * jax.random.uniform(k_v, (mid_chan,),
                                                 dtype=jnp.float32)
    eps = 1e-5
    bn_scale = gamma / jnp.sqrt(running_var + eps)
    bn_bias = beta - running_mean * bn_scale

    ref_nchw = reference_forward_nchw(x_nchw, w1_oihw, bn_scale, bn_bias,
                                      w2_oihw)

    # Multi-band path (spatial grid axis exercised: grid = (2 images, 2 bands)).
    out_banded = bisenet_output(x_nchw, w1_oihw, bn_scale, bn_bias, w2_oihw,
                                band_rows=8)
    out_banded = jax.block_until_ready(out_banded)
    assert out_banded.shape == (N, n_classes, H, W)
    err_b = float(jnp.max(jnp.abs(out_banded - ref_nchw)))
    assert jnp.allclose(out_banded, ref_nchw, atol=2e-2, rtol=2e-2), err_b

    # Auto band selection (whole image per step at this toy size).
    out_auto = bisenet_output(x_nchw, w1_oihw, bn_scale, bn_bias, w2_oihw)
    out_auto = jax.block_until_ready(out_auto)
    err_a = float(jnp.max(jnp.abs(out_auto - ref_nchw)))
    assert jnp.allclose(out_auto, ref_nchw, atol=2e-2, rtol=2e-2), err_a

    print("KERNEL_OK")
</pallas_src>

<mosaic_0001>
module attributes {stable_mosaic.version = 11 : i64} {
  func.func @_bisenet_band_kernel(%arg0: i32, %arg1: i32, %arg2: memref<1x1x4x182xbf16, #tpu.memory_space<vmem>>, %arg3: memref<9x8x4xbf16, #tpu.memory_space<vmem>>, %arg4: memref<8x1xf32, #tpu.memory_space<vmem>>, %arg5: memref<3x8xbf16, #tpu.memory_space<vmem>>, %arg6: memref<1x1x3x144xf32, #tpu.memory_space<vmem>>) attributes {dimension_semantics = [#tpu.dimension_semantics<parallel>, #tpu.dimension_semantics<parallel>], iteration_bounds = array<i64: 2, 2>, scalar_prefetch = 0 : i64, scratch_operands = 0 : i64, tpu.core_type = #tpu.core_type<tc>, window_params = [{transform_indices = @transform_0, window_bounds = array<i64: 1, 1, 4, 182>}, {pipeline_mode = #tpu.pipeline_mode<synchronous>, transform_indices = @transform_1, window_bounds = array<i64: 9, 8, 4>}, {pipeline_mode = #tpu.pipeline_mode<synchronous>, transform_indices = @transform_2, window_bounds = array<i64: 8, 1>}, {pipeline_mode = #tpu.pipeline_mode<synchronous>, transform_indices = @transform_3, window_bounds = array<i64: 3, 8>}, {transform_indices = @transform_4, window_bounds = array<i64: 1, 1, 3, 144>}]} {
    %c0 = arith.constant 0 : index
    %c0_0 = arith.constant 0 : index
    %c0_1 = arith.constant 0 : index
    %c0_2 = arith.constant 0 : index
    %0 = vector.load %arg2[%c0, %c0_0, %c0_1, %c0_2] : memref<1x1x4x182xbf16, #tpu.memory_space<vmem>>, vector<1x1x4x182xbf16>
    %1 = vector.shape_cast %0 : vector<1x1x4x182xbf16> to vector<4x182xbf16>
    %2 = vector.extract_strided_slice %1 {offsets = [0, 0], sizes = [4, 144], strides = [1, 1]} : vector<4x182xbf16> to vector<4x144xbf16>
    %c0_3 = arith.constant 0 : index
    %c0_4 = arith.constant 0 : index
    %c0_5 = arith.constant 0 : index
    %3 = vector.load %arg3[%c0_3, %c0_4, %c0_5] : memref<9x8x4xbf16, #tpu.memory_space<vmem>>, vector<1x8x4xbf16>
    %4 = vector.shape_cast %3 : vector<1x8x4xbf16> to vector<8x4xbf16>
    %cst = arith.constant dense<0.000000e+00> : vector<8x144xf32>
    %5 = tpu.matmul %4, %2, %cst {dimension_numbers = #tpu.dot_dimension_numbers<[1], [0], [0], [1], [0, 0, 1, 1], [], []>} : vector<8x4xbf16>, vector<4x144xbf16>, vector<8x144xf32> -> vector<8x144xf32>
    %6 = vector.extract_strided_slice %1 {offsets = [0, 1], sizes = [4, 144], strides = [1, 1]} : vector<4x182xbf16> to vector<4x144xbf16>
    %c1 = arith.constant 1 : index
    %c0_6 = arith.constant 0 : index
    %c0_7 = arith.constant 0 : index
    %7 = vector.load %arg3[%c1, %c0_6, %c0_7] : memref<9x8x4xbf16, #tpu.memory_space<vmem>>, vector<1x8x4xbf16>
    %8 = vector.shape_cast %7 : vector<1x8x4xbf16> to vector<8x4xbf16>
    %cst_8 = arith.constant dense<0.000000e+00> : vector<8x144xf32>
    %9 = tpu.matmul %8, %6, %cst_8 {dimension_numbers = #tpu.dot_dimension_numbers<[1], [0], [0], [1], [0, 0, 1, 1], [], []>} : vector<8x4xbf16>, vector<4x144xbf16>, vector<8x144xf32> -> vector<8x144xf32>
    %10 = arith.addf %5, %9 : vector<8x144xf32>
    %11 = vector.extract_strided_slice %1 {offsets = [0, 2], sizes = [4, 144], strides = [1, 1]} : vector<4x182xbf16> to vector<4x144xbf16>
    %c2 = arith.constant 2 : index
    %c0_9 = arith.constant 0 : index
    %c0_10 = arith.constant 0 : index
    %12 = vector.load %arg3[%c2, %c0_9, %c0_10] : memref<9x8x4xbf16, #tpu.memory_space<vmem>>, vector<1x8x4xbf16>
    %13 = vector.shape_cast %12 : vector<1x8x4xbf16> to vector<8x4xbf16>
    %cst_11 = arith.constant dense<0.000000e+00> : vector<8x144xf32>
    %14 = tpu.matmul %13, %11, %cst_11 {dimension_numbers = #tpu.dot_dimension_numbers<[1], [0], [0], [1], [0, 0, 1, 1], [], []>} : vector<8x4xbf16>, vector<4x144xbf16>, vector<8x144xf32> -> vector<8x144xf32>
    %15 = arith.addf %10, %14 : vector<8x144xf32>
    %16 = vector.extract_strided_slice %1 {offsets = [0, 18], sizes = [4, 144], strides = [1, 1]} : vector<4x182xbf16> to vector<4x144xbf16>
    %c3 = arith.constant 3 : index
    %c0_12 = arith.constant 0 : index
    %c0_13 = arith.constant 0 : index
    %17 = vector.load %arg3[%c3, %c0_12, %c0_13] : memref<9x8x4xbf16, #tpu.memory_space<vmem>>, vector<1x8x4xbf16>
    %18 = vector.shape_cast %17 : vector<1x8x4xbf16> to vector<8x4xbf16>
    %cst_14 = arith.constant dense<0.000000e+00> : vector<8x144xf32>
    %19 = tpu.matmul %18, %16, %cst_14 {dimension_numbers = #tpu.dot_dimension_numbers<[1], [0], [0], [1], [0, 0, 1, 1], [], []>} : vector<8x4xbf16>, vector<4x144xbf16>, vector<8x144xf32> -> vector<8x144xf32>
    %20 = arith.addf %15, %19 : vector<8x144xf32>
    %21 = vector.extract_strided_slice %1 {offsets = [0, 19], sizes = [4, 144], strides = [1, 1]} : vector<4x182xbf16> to vector<4x144xbf16>
    %c4 = arith.constant 4 : index
    %c0_15 = arith.constant 0 : index
    %c0_16 = arith.constant 0 : index
    %22 = vector.load %arg3[%c4, %c0_15, %c0_16] : memref<9x8x4xbf16, #tpu.memory_space<vmem>>, vector<1x8x4xbf16>
    %23 = vector.shape_cast %22 : vector<1x8x4xbf16> to vector<8x4xbf16>
    %cst_17 = arith.constant dense<0.000000e+00> : vector<8x144xf32>
    %24 = tpu.matmul %23, %21, %cst_17 {dimension_numbers = #tpu.dot_dimension_numbers<[1], [0], [0], [1], [0, 0, 1, 1], [], []>} : vector<8x4xbf16>, vector<4x144xbf16>, vector<8x144xf32> -> vector<8x144xf32>
    %25 = arith.addf %20, %24 : vector<8x144xf32>
    %26 = vector.extract_strided_slice %1 {offsets = [0, 20], sizes = [4, 144], strides = [1, 1]} : vector<4x182xbf16> to vector<4x144xbf16>
    %c5 = arith.constant 5 : index
    %c0_18 = arith.constant 0 : index
    %c0_19 = arith.constant 0 : index
    %27 = vector.load %arg3[%c5, %c0_18, %c0_19] : memref<9x8x4xbf16, #tpu.memory_space<vmem>>, vector<1x8x4xbf16>
    %28 = vector.shape_cast %27 : vector<1x8x4xbf16> to vector<8x4xbf16>
    %cst_20 = arith.constant dense<0.000000e+00> : vector<8x144xf32>
    %29 = tpu.matmul %28, %26, %cst_20 {dimension_numbers = #tpu.dot_dimension_numbers<[1], [0], [0], [1], [0, 0, 1, 1], [], []>} : vector<8x4xbf16>, vector<4x144xbf16>, vector<8x144xf32> -> vector<8x144xf32>
    %30 = arith.addf %25, %29 : vector<8x144xf32>
    %31 = vector.extract_strided_slice %1 {offsets = [0, 36], sizes = [4, 144], strides = [1, 1]} : vector<4x182xbf16> to vector<4x144xbf16>
    %c6 = arith.constant 6 : index
    %c0_21 = arith.constant 0 : index
    %c0_22 = arith.constant 0 : index
    %32 = vector.load %arg3[%c6, %c0_21, %c0_22] : memref<9x8x4xbf16, #tpu.memory_space<vmem>>, vector<1x8x4xbf16>
    %33 = vector.shape_cast %32 : vector<1x8x4xbf16> to vector<8x4xbf16>
    %cst_23 = arith.constant dense<0.000000e+00> : vector<8x144xf32>
    %34 = tpu.matmul %33, %31, %cst_23 {dimension_numbers = #tpu.dot_dimension_numbers<[1], [0], [0], [1], [0, 0, 1, 1], [], []>} : vector<8x4xbf16>, vector<4x144xbf16>, vector<8x144xf32> -> vector<8x144xf32>
    %35 = arith.addf %30, %34 : vector<8x144xf32>
    %36 = vector.extract_strided_slice %1 {offsets = [0, 37], sizes = [4, 144], strides = [1, 1]} : vector<4x182xbf16> to vector<4x144xbf16>
    %c7 = arith.constant 7 : index
    %c0_24 = arith.constant 0 : index
    %c0_25 = arith.constant 0 : index
    %37 = vector.load %arg3[%c7, %c0_24, %c0_25] : memref<9x8x4xbf16, #tpu.memory_space<vmem>>, vector<1x8x4xbf16>
    %38 = vector.shape_cast %37 : vector<1x8x4xbf16> to vector<8x4xbf16>
    %cst_26 = arith.constant dense<0.000000e+00> : vector<8x144xf32>
    %39 = tpu.matmul %38, %36, %cst_26 {dimension_numbers = #tpu.dot_dimension_numbers<[1], [0], [0], [1], [0, 0, 1, 1], [], []>} : vector<8x4xbf16>, vector<4x144xbf16>, vector<8x144xf32> -> vector<8x144xf32>
    %40 = arith.addf %35, %39 : vector<8x144xf32>
    %41 = vector.extract_strided_slice %1 {offsets = [0, 38], sizes = [4, 144], strides = [1, 1]} : vector<4x182xbf16> to vector<4x144xbf16>
    %c8 = arith.constant 8 : index
    %c0_27 = arith.constant 0 : index
    %c0_28 = arith.constant 0 : index
    %42 = vector.load %arg3[%c8, %c0_27, %c0_28] : memref<9x8x4xbf16, #tpu.memory_space<vmem>>, vector<1x8x4xbf16>
    %43 = vector.shape_cast %42 : vector<1x8x4xbf16> to vector<8x4xbf16>
    %cst_29 = arith.constant dense<0.000000e+00> : vector<8x144xf32>
    %44 = tpu.matmul %43, %41, %cst_29 {dimension_numbers = #tpu.dot_dimension_numbers<[1], [0], [0], [1], [0, 0, 1, 1], [], []>} : vector<8x4xbf16>, vector<4x144xbf16>, vector<8x144xf32> -> vector<8x144xf32>
    %45 = arith.addf %40, %44 : vector<8x144xf32>
    %c0_30 = arith.constant 0 : index
    %c0_31 = arith.constant 0 : index
    %46 = vector.load %arg4[%c0_30, %c0_31] : memref<8x1xf32, #tpu.memory_space<vmem>>, vector<8x1xf32>
    %47 = vector.broadcast %46 : vector<8x1xf32> to vector<8x144xf32>
    %48 = arith.addf %45, %47 : vector<8x144xf32>
    %cst_32 = arith.constant 0.000000e+00 : f32
    %49 = vector.broadcast %cst_32 : f32 to vector<8x144xf32>
    %50 = arith.maximumf %48, %49 : vector<8x144xf32>
    %c0_33 = arith.constant 0 : index
    %c0_34 = arith.constant 0 : index
    %51 = vector.load %arg5[%c0_33, %c0_34] : memref<3x8xbf16, #tpu.memory_space<vmem>>, vector<3x8xbf16>
    %52 = arith.truncf %50 : vector<8x144xf32> to vector<8x144xbf16>
    %cst_35 = arith.constant dense<0.000000e+00> : vector<3x144xf32>
    %53 = tpu.matmul %51, %52, %cst_35 {dimension_numbers = #tpu.dot_dimension_numbers<[1], [0], [0], [1], [0, 0, 1, 1], [], []>} : vector<3x8xbf16>, vector<8x144xbf16>, vector<3x144xf32> -> vector<3x144xf32>
    %c0_36 = arith.constant 0 : index
    %c0_37 = arith.constant 0 : index
    %c0_38 = arith.constant 0 : index
    %c0_39 = arith.constant 0 : index
    %54 = vector.load %arg6[%c0_36, %c0_37, %c0_38, %c0_39] : memref<1x1x3x144xf32, #tpu.memory_space<vmem>>, vector<1x1x3x144xf32>
    %55 = vector.shape_cast %54 : vector<1x1x3x144xf32> to vector<3x144xf32>
    %56 = vector.shape_cast %53 : vector<3x144xf32> to vector<1x1x3x144xf32>
    tpu.vector_store %arg6[%c0_36, %c0_37, %c0_38, %c0_39], %56 {strides = array<i32>} : memref<1x1x3x144xf32, #tpu.memory_space<vmem>>, vector<1x1x3x144xf32>,
    return
  }
  func.func @transform_0(%arg0: i32, %arg1: i32) -> (i32, i32, i32, i32) {
    %c0_i32 = arith.constant 0 : i32
    %c0_i32_0 = arith.constant 0 : i32
    %c0_i32_1 = arith.constant 0 : i32
    return %arg0, %arg1, %c0_i32, %c0_i32_0 : i32, i32, i32, i32
  }
  func.func @transform_1(%arg0: i32, %arg1: i32) -> (i32, i32, i32) {
    %c0_i32 = arith.constant 0 : i32
    %c0_i32_0 = arith.constant 0 : i32
    %c0_i32_1 = arith.constant 0 : i32
    %c0_i32_2 = arith.constant 0 : i32
    return %c0_i32, %c0_i32_0, %c0_i32_1 : i32, i32, i32
  }
  func.func @transform_2(%arg0: i32, %arg1: i32) -> (i32, i32) {
    %c0_i32 = arith.constant 0 : i32
    %c0_i32_0 = arith.constant 0 : i32
    %c0_i32_1 = arith.constant 0 : i32
    return %c0_i32, %c0_i32_0 : i32, i32
  }
  func.func @transform_3(%arg0: i32, %arg1: i32) -> (i32, i32) {
    %c0_i32 = arith.constant 0 : i32
    %c0_i32_0 = arith.constant 0 : i32
    %c0_i32_1 = arith.constant 0 : i32
    return %c0_i32, %c0_i32_0 : i32, i32
  }
  func.func @transform_4(%arg0: i32, %arg1: i32) -> (i32, i32, i32, i32) {
    %c0_i32 = arith.constant 0 : i32
    %c0_i32_0 = arith.constant 0 : i32
    %c0_i32_1 = arith.constant 0 : i32
    return %arg0, %arg1, %c0_i32, %c0_i32_0 : i32, i32, i32, i32
  }
}

</mosaic_0001>

<bundles_post_ra>
// kernel: tpu_custom_call.1
= control target key start
LH: loop header
LB: loop body
LE: loop exit
PB: predicated region body
PF: predicated region fallthrough
CT: control target
= control target key end

     0   :  { %s1110_s15 = smov 0   ;;  %s1112_s16 = smov 0   ;;  %s1236_s0 = inlined_call_operand.vmem [shape: bf16[2,2,4,182], index: 0, kind: input, shape index: {}]   ;;  %s1237_s1 = inlined_call_operand.vmem [shape: bf16[9,8,4], index: 1, kind: input, shape index: {}]   ;;  %s1238_s2 = inlined_call_operand.vmem [shape: f32[8,1], index: 2, kind: input, shape index: {}]   ;;  %s1239_s3 = inlined_call_operand.vmem [shape: bf16[3,8], index: 3, kind: input, shape index: {}]   ;;  %s1240_s4 = inlined_call_operand.vmem [shape: f32[2,2,3,144], index: 4, kind: output, shape index: {}]  }
   0x1   :  { %s1114_s17 = smov 0   ;;  %s1116_s18 = smov 0  }
   0x2   :  { %s1118_s19 = smov 0  }
   0x3 LB: > { %s23_s20 = sadd.s32 1, %s1066_s17  ;;  %s26_s21 = sadd.s32 1, %s1070_s18  ;;  %s1074_s19 = sphi %s1118_s19, %s14_s19   ;;  %s1070_s18 = sphi %s1116_s18, %s1244_s18   ;;  %s1066_s17 = sphi %s1114_s17, %s1243_s17   ;;  %s1062_s16 = sphi %s1112_s16, %s1242_s16   ;;  %s1058_s15 = sphi %s1110_s15, %s1241_s15  }
   0x4   : > { %p24_p0 = scmp.ge.s32.totalorder %s23_s20, 2  ;;  %p948_p1 = scmp.ge.s32.totalorder %s1074_s19, 1 }
   0x5   : > { %p182_p2 = scmp.lt.s32.totalorder %s1074_s19, 5 }
   0x6   : > { %s1246_s20 = smov (%p24_p0, %s23_s20), 0  ;;  %s1248_s21 = smov (!%p24_p0, %s26_s21), %s1070_s18 }
   0x7   : > { %p183_p3 = pnand %p948_p1, %p182_p2  ;;  %p28_p4 = scmp.ge.s32.totalorder %s1248_s21, 2 }
   0x8   : > { %p216_p5 = scmp.lt.s32.totalorder (!%p183_p3), %s1062_s16, 1  ;;  %p218_p6 = scmp.lt.s32.totalorder (!%p183_p3), %s1058_s15, 1  ;;  %v1076_v0 = vmov (!%p183_p3), 0   ;;  %vm258_vm0 = vcmask (!%p183_p3), 1041408   ;;  %vm254_vm1 = vcmask (!%p183_p3), 31744   ;;  %v776_v5 = vld [vmem:[%s1238_s2] sm:$0xff] (!%p183_p3) }
   0x9   : > { %s1250_s21 = smov (%p28_p4, %s1248_s21), 0  ;;  %186 = sbr.rel (%p183_p3) target bundleno = 619 (0x26b), region = 36 }
   0xa   : > { %297 = vmatprep.mubr.bf16.mxu0 (!%p183_p3), %v1076_v0  ;;  %347 = vmatprep.mubr.bf16.mxu1 (!%p183_p3), %v1076_v0  ;;  %s1077_s29 = smov (!%p183_p3), 127   ;;  %s1078_s30 = smov (!%p183_p3), 126   ;;  %v236_v4 = vld [vmem:[%s1237_s1] sm:$0xf] (!%p183_p3)  ;;  %vm252_vm2 = vcmask (!%p183_p3), 1039360   ;;  %vm362_vm3 = vcmask (!%p183_p3), 1031168  }
   0xb   : > { %1035 = vset.pattern.permute.xlu0 (!%p183_p3), %v1076_v0  ;;  %s1079_s7 = smov (!%p183_p3), 110   ;;  %s1080_s8 = smov (!%p183_p3), 109   ;;  %vm422_vm4 = vcmask (!%p183_p3), 900096   ;;  %v955_v13 = vld [vmem:[%s1237_s1 + $0x4] sm:$0xf] (!%p183_p3)  ;;  %vm482_vm5 = vcmask (!%p183_p3), 891904  }
   0xc   : > { %s1081_s9 = smov (!%p183_p3), 108   ;;  %s1082_s10 = smov (!%p183_p3), 92   ;;  %v964_v21 = vld [vmem:[%s1237_s1 + $0xc] sm:$0xf] (!%p183_p3)  ;;  %vm542_vm6 = vcmask (!%p183_p3), 883712   ;;  %vm602_vm7 = vcmask (!%p183_p3), 752640  }
   0xd   : > { %s1083_s11 = smov (!%p183_p3), 91   ;;  %s1084_s12 = smov (!%p183_p3), 90   ;;  %v961_v23 = vld [vmem:[%s1237_s1 + $0x8] sm:$0xf] (!%p183_p3)  ;;  %v970_v31 = vld [vmem:[%s1237_s1 + $0x14] sm:$0xf] (!%p183_p3) }
   0xe   : > { %vm662_vm8 = vcmask (!%p183_p3), 744448   ;;  %v967_v33 = vld [vmem:[%s1237_s1 + $0x10] sm:$0xf] (!%p183_p3)  ;;  %vm722_vm9 = vcmask (!%p183_p3), 736256   ;;  %v976_v41 = vld [vmem:[%s1237_s1 + $0x1c] sm:$0xf] (!%p183_p3) }
   0xf   : > { %v973_v43 = vld [vmem:[%s1237_s1 + $0x18] sm:$0xf] (!%p183_p3)  ;;  %v979_v45 = vld [vmem:[%s1237_s1 + $0x20] sm:$0xf] (!%p183_p3)  ;;  %vm793_vm10 = vcmask (!%p183_p3), 1043456   ;;  %vm789_vm11 = vcmask (!%p183_p3), 64512  }
  0x10   : > { %s1252_s16 = smov (!%p216_p5, %s1062_s16), 1  ;;  %s1254_s15 = smov (!%p218_p6, %s1058_s15), 1  ;;  %vm845_vm12 = vcmask 1042432   ;;  %vm846_vm13 = vcmask 129028  }
  0x11   : > { %s950_s22 = sshll.u32 %s1252_s16, 2  ;;  %s949_s23 = sshll.u32 %s1254_s15, 1  ;;  %vm847_vm14 = vmor %vm846_vm13, %vm845_vm12 }
  0x12   : > { %s1143_s24 = sadd.s32 %s950_s22, %s949_s23 }
  0x13   : > { %s951_s25 = sshll.u32 %s1143_s24, 1  ;;  %s954_s13 = sshll.u32 %s1143_s24, 2 }
  0x14   : > { %s224_s28 = scalar_lea.vmem %s1236_s0, %s951_s25  ;;  %s233_s16 = scalar_lea.vmem %s1240_s4, %s954_s13 }
  0x15   : > { %v956_v1 = vld.sshfl [vmem:[%s224_s28] sm:$0x33 pattern:$0x76325410] }
  0x16   : > { %248 = vrot.lane.b32.xlu0 %v956_v1, %s1077_s29  ;;  %358 = vrot.lane.b32.xlu1 %v956_v1, %s1078_s30  ;;  %v247_v2 = vcombine.high %v956_v1, %v956_v1  ;;  %v310_v3 = vsel %vm258_vm0, %v956_v1, 0 }
  0x18   : > { %959 = vmatprep.subr.msk.bf16.mxu1 %vm258_vm0, %v247_v2 }
  0x19   : > { %316 = vmatpush1.bf16.msra.mxu1 %v310_v3 }
  0x1a   : > { %250 = vrot.lane.b32.xlu0 %v247_v2, %s1077_s29  ;;  %360 = vrot.lane.b32.xlu1 %v247_v2, %s1078_s30 }
  0x1c   : > { %960 = vmatmul.mubr.msk.bf16.vlgmr.msra.gmra.mrb[0].mxu1 %vm254_vm1, %v236_v4 }
  0x1d   : > { %465 = vmatprep.mubr.bf16.mxu1 %v1076_v0 }
  0x1e   : > { %420 = vrot.lane.b32.xlu1 %v247_v2, %s1079_s7  ;;  %418 = vrot.lane.b32.xlu0 %v956_v1, %s1079_s7 }
  0x22   : > { %480 = vrot.lane.b32.xlu1 %v247_v2, %s1080_s8  ;;  %478 = vrot.lane.b32.xlu0 %v956_v1, %s1080_s8 }
  0x26   : > { %540 = vrot.lane.b32.xlu1 %v247_v2, %s1081_s9  ;;  %538 = vrot.lane.b32.xlu0 %v956_v1, %s1081_s9 }
  0x2a   : > { %600 = vrot.lane.b32.xlu1 %v247_v2, %s1082_s10  ;;  %598 = vrot.lane.b32.xlu0 %v956_v1, %s1082_s10 }
  0x2e   : > { %660 = vrot.lane.b32.xlu1 %v247_v2, %s1083_s11  ;;  %658 = vrot.lane.b32.xlu0 %v956_v1, %s1083_s11 }
  0x32   : > { %720 = vrot.lane.b32.xlu1 %v247_v2, %s1084_s12  ;;  %718 = vrot.lane.b32.xlu0 %v956_v1, %s1084_s12 }
  0x36   : > { %779 = vperm.xlu0 %1035, %v776_v5  }
  0x88   : > { %v249_v6 = vpop.permute.xlu0 %248  ;;  %v359_v7 = vpop.permute.xlu1 %358 }
  0x8c   : > { %v251_v8 = vpop.permute.xlu0 %250  ;;  %v361_v9 = vpop.permute.xlu1 %360 }
  0x8d   : > { %957 = vmatprep.subr.msk.bf16.mxu0 %vm258_vm0, %v251_v8  ;;  %v253_v10 = vsel %vm252_vm2, %v249_v6, %v251_v8  ;;  %v363_v11 = vsel %vm362_vm3, %v359_v7, %v361_v9 }
  0x8e   : > { %v260_v12 = vsel %vm258_vm0, %v253_v10, 0  ;;  %v368_v14 = vsel %vm258_vm0, %v363_v11, 0 }
  0x8f   : > { %266 = vmatpush1.bf16.msra.mxu0 %v260_v12 }
  0x90   : > { %962 = vmatprep.subr.msk.bf16.mxu0 %vm258_vm0, %v361_v9  ;;  %v421_v15 = vpop.permute.xlu1 %420  ;;  %v419_v16 = vpop.permute.xlu0 %418 }
  0x91   : > { %v423_v17 = vsel %vm422_vm4, %v419_v16, %v421_v15  ;;  %965 = vmatprep.subr.msk.bf16.mxu1 %vm258_vm0, %v421_v15 }
  0x92   : > { %958 = vmatmul.mubr.msk.bf16.vlgmr.msra.gmra.mrb[0].mxu0 %vm254_vm1, %v955_v13  ;;  %v428_v18 = vsel %vm258_vm0, %v423_v17, 0 }
  0x93   : > { %374 = vmatpush1.bf16.msra.mxu0 %v368_v14  ;;  %405 = vmatprep.mubr.bf16.mxu0 %v1076_v0 }
  0x94   : > { %434 = vmatpush1.bf16.msra.mxu1 %v428_v18  ;;  %v481_v19 = vpop.permute.xlu1 %480  ;;  %v479_v20 = vpop.permute.xlu0 %478 }
  0x95   : > { %v483_v22 = vsel %vm482_vm5, %v479_v20, %v481_v19  ;;  %968 = vmatprep.subr.msk.bf16.mxu0 %vm258_vm0, %v481_v19 }
  0x96   : > { %v488_v24 = vsel %vm258_vm0, %v483_v22, 0 }
  0x97   : > { %966 = vmatmul.mubr.msk.bf16.vlgmr.msra.gmra.mrb[4].mxu1 %vm254_vm1, %v964_v21 }
  0x98   : > { %v541_v25 = vpop.permute.xlu1 %540  ;;  %v539_v26 = vpop.permute.xlu0 %538  ;;  %585 = vmatprep.mubr.bf16.mxu1 %v1076_v0 }
  0x99   : > { %v543_v27 = vsel %vm542_vm6, %v539_v26, %v541_v25  ;;  %971 = vmatprep.subr.msk.bf16.mxu1 %vm258_vm0, %v541_v25 }
  0x9a   : > { %963 = vmatmul.mubr.msk.bf16.vlgmr.msra.gmra.mrb[4].mxu0 %vm254_vm1, %v961_v23  ;;  %v548_v28 = vsel %vm258_vm0, %v543_v27, 0 }
  0x9b   : > { %494 = vmatpush1.bf16.msra.mxu0 %v488_v24  ;;  %525 = vmatprep.mubr.bf16.mxu0 %v1076_v0 }
  0x9c   : > { %554 = vmatpush1.bf16.msra.mxu1 %v548_v28  ;;  %v601_v29 = vpop.permute.xlu1 %600  ;;  %v599_v30 = vpop.permute.xlu0 %598 }
  0x9d   : > { %v603_v32 = vsel %vm602_vm7, %v599_v30, %v601_v29  ;;  %974 = vmatprep.subr.msk.bf16.mxu0 %vm258_vm0, %v601_v29 }
  0x9e   : > { %v608_v34 = vsel %vm258_vm0, %v603_v32, 0 }
  0x9f   : > { %972 = vmatmul.mubr.msk.bf16.vlgmr.msra.gmra.mrb[8].mxu1 %vm254_vm1, %v970_v31 }
  0xa0   : > { %v661_v35 = vpop.permute.xlu1 %660  ;;  %v659_v36 = vpop.permute.xlu0 %658  ;;  %705 = vmatprep.mubr.bf16.mxu1 %v1076_v0 }
  0xa1   : > { %v663_v37 = vsel %vm662_vm8, %v659_v36, %v661_v35  ;;  %977 = vmatprep.subr.msk.bf16.mxu1 %vm258_vm0, %v661_v35 }
  0xa2   : > { %969 = vmatmul.mubr.msk.bf16.vlgmr.msra.gmra.mrb[8].mxu0 %vm254_vm1, %v967_v33  ;;  %v668_v38 = vsel %vm258_vm0, %v663_v37, 0 }
  0xa3   : > { %614 = vmatpush1.bf16.msra.mxu0 %v608_v34  ;;  %645 = vmatprep.mubr.bf16.mxu0 %v1076_v0 }
  0xa4   : > { %674 = vmatpush1.bf16.msra.mxu1 %v668_v38  ;;  %v721_v39 = vpop.permute.xlu1 %720  ;;  %v719_v40 = vpop.permute.xlu0 %718 }
  0xa5   : > { %v723_v42 = vsel %vm722_vm9, %v719_v40, %v721_v39  ;;  %980 = vmatprep.subr.msk.bf16.mxu0 %vm258_vm0, %v721_v39 }
  0xa6   : > { %v728_v44 = vsel %vm258_vm0, %v723_v42, 0  ;;  %v786_v42 = vld [vmem:[%s1239_s3] sm:$0x3] }
  0xa7   : > { %978 = vmatmul.mubr.msk.bf16.vlgmr.msra.gmra.mrb[12].mxu1 %vm254_vm1, %v976_v41 }
  0xa8   : > { %832 = vmatprep.mubr.bf16.mxu1 %v1076_v0 }
  0xaa   : > { %975 = vmatmul.mubr.msk.bf16.vlgmr.msra.gmra.mrb[12].mxu0 %vm254_vm1, %v973_v43 }
  0xab   : > { %734 = vmatpush1.bf16.msra.mxu0 %v728_v44  ;;  %765 = vmatprep.mubr.bf16.mxu0 %v1076_v0 }
  0xb2   : > { %981 = vmatmul.mubr.msk.bf16.vlgmr.msra.gmra.mrb[16].mxu0 %vm254_vm1, %v979_v45 }
  0xb5   : > { %v780_v29 = vpop.permute.xlu0 %779 }
  0xef   : > { %v349_v46 = vpop.f32.mrb[0].mxu1 }
  0xf0   : > { %v351_v47 = vpop.f32.mrb[1].mxu1 }
  0xf1   : > { %v353_v48 = vpop.f32.mrb[2].mxu1 }
  0xf2   : > { %v354_v49 = vpop.f32.mrb[3].mxu1 }
 0x165   : > { %v299_v50 = vpop.f32.mrb[0].mxu0 }
 0x166   : > { %v350_v51 = vadd.f32 %v349_v46, %v299_v50  ;;  %v301_v52 = vpop.f32.mrb[1].mxu0 }
 0x167   : > { %v352_v53 = vadd.f32 %v351_v47, %v301_v52  ;;  %v303_v54 = vpop.f32.mrb[2].mxu0 }
 0x168   : > { %v304_v55 = vpop.f32.mrb[3].mxu0 }
 0x16a   : > { %v467_v56 = vpop.f32.mrb[4].mxu1 }
 0x16b   : > { %v469_v57 = vpop.f32.mrb[5].mxu1 }
 0x16c   : > { %v471_v58 = vpop.f32.mrb[6].mxu1 }
 0x16d   : > { %v407_v59 = vpop.f32.mrb[4].mxu0  ;;  %v472_v60 = vpop.f32.mrb[7].mxu1 }
 0x16e   : > { %v414_v61 = vadd.f32 %v407_v59, %v350_v51  ;;  %v409_v62 = vpop.f32.mrb[5].mxu0 }
 0x16f   : > { %v415_v63 = vadd.f32 %v409_v62, %v352_v53  ;;  %v411_v0 = vpop.f32.mrb[6].mxu0 }
 0x170   : > { %v474_v1 = vadd.f32 %v467_v56, %v414_v61  ;;  %v412_v2 = vpop.f32.mrb[7].mxu0 }
 0x171   : > { %v475_v3 = vadd.f32 %v469_v57, %v415_v63 }
 0x172   : > { %v587_v4 = vpop.f32.mrb[8].mxu1 }
 0x173   : > { %v589_v5 = vpop.f32.mrb[9].mxu1 }
 0x174   : > { %v591_v6 = vpop.f32.mrb[10].mxu1 }
 0x175   : > { %v527_v7 = vpop.f32.mrb[8].mxu0  ;;  %v592_v8 = vpop.f32.mrb[11].mxu1 }
 0x176   : > { %v534_v9 = vadd.f32 %v527_v7, %v474_v1  ;;  %v529_v10 = vpop.f32.mrb[9].mxu0 }
 0x177   : > { %v535_v11 = vadd.f32 %v529_v10, %v475_v3  ;;  %v531_v12 = vpop.f32.mrb[10].mxu0 }
 0x178   : > { %v594_v13 = vadd.f32 %v587_v4, %v534_v9  ;;  %v532_v14 = vpop.f32.mrb[11].mxu0 }
 0x179   : > { %v595_v15 = vadd.f32 %v589_v5, %v535_v11 }
 0x17a   : > { %v707_v16 = vpop.f32.mrb[12].mxu1 }
 0x17b   : > { %v709_v17 = vpop.f32.mrb[13].mxu1 }
 0x17c   : > { %v711_v18 = vpop.f32.mrb[14].mxu1 }
 0x17d   : > { %v647_v19 = vpop.f32.mrb[12].mxu0  ;;  %v712_v20 = vpop.f32.mrb[15].mxu1 }
 0x17e   : > { %v654_v21 = vadd.f32 %v647_v19, %v594_v13  ;;  %v649_v22 = vpop.f32.mrb[13].mxu0 }
 0x17f   : > { %v655_v23 = vadd.f32 %v649_v22, %v595_v15  ;;  %v651_v24 = vpop.f32.mrb[14].mxu0 }
 0x180   : > { %v714_v25 = vadd.f32 %v707_v16, %v654_v21  ;;  %v652_v26 = vpop.f32.mrb[15].mxu0 }
 0x181   : > { %v715_v27 = vadd.f32 %v709_v17, %v655_v23 }
 0x185   : > { %v767_v28 = vpop.f32.mrb[16].mxu0 }
 0x186   : > { %v774_v30 = vadd.f32 %v767_v28, %v714_v25  ;;  %v769_v31 = vpop.f32.mrb[17].mxu0 }
 0x187   : > { %v775_v32 = vadd.f32 %v769_v31, %v715_v27  ;;  %v771_v33 = vpop.f32.mrb[18].mxu0 }
 0x188   : > { %v782_v34 = vadd.f32 %v780_v29, %v774_v30  ;;  %v772_v35 = vpop.f32.mrb[19].mxu0 }
 0x189   : > { %v783_v36 = vadd.f32 %v780_v29, %v775_v32 }
 0x18a   : > { %v784_v37 = vmax.f32 %v782_v34, 0.0 }
 0x18b   : > { %v785_v38 = vmax.f32 %v783_v36, 0.0 }
 0x18c   : > { %v787_v39 = vpack.c.bf16 %v784_v37, %v784_v37 }
 0x18d   : > { %v788_v40 = vpack.c.bf16 %v785_v38, %v785_v38 }
 0x18e   : > { %v795_v41 = vsel %vm793_vm10, %v787_v39, 0 }
 0x18f   : > { %982 = vmatprep.subr.msk.bf16.mxu1 %vm793_vm10, %v788_v40 }
 0x190   : > { %801 = vmatpush1.bf16.msra.mxu1 %v795_v41 }
 0x193   : > { %983 = vmatmul.mubr.msk.bf16.vlgmr.msra.gmra.mrb[16].mxu1 %vm789_vm11, %v786_v42 }
 0x266   : > { %v834_v43 = vpop.f32.mrb[16].mxu1 }
 0x267   : > { %v836_v44 = vpop.f32.mrb[17].mxu1 }
 0x268   : > { %v843_v45 = vcombine.low %v834_v43, %v836_v44  ;;  %v838_v46 = vpop.f32.mrb[18].mxu1 }
 0x269   : > { %v839_v47 = vpop.f32.mrb[19].mxu1 }
 0x26a   : > { %848 = vst.msk [vmem:[%s233_s16] sm:$0x77] %vm847_vm14, %v843_v45 }
 0x26b PF: > { %s14_s19 = sadd.s32 1, %s1074_s19   ;;  %s1241_s15 = smov %s1066_s17 }
 0x26c   : > { %p11_p7 = scmp.ge.s32.totalorder %s14_s19, 6   ;;  %s1242_s16 = smov %s1070_s18 }
 0x26d   : > { %s1243_s17 = smov %s1246_s20  ;;  %s1244_s18 = smov %s1250_s21 }
 0x26e   :  { %13 = sbr.rel (!%p11_p7) target bundleno = 3 (0x3), region = 74 }

</bundles_post_ra>
